<compile_context>
chip_gen: v7x
topology: tpu7x:2x2x1
jax: 0.10.0
libtpu: 0.0.40
codegen_flags: <defaults>
</compile_context>

<pallas_src>
import jax
import jax.numpy as jnp
from jax.experimental import pallas as pl
from jax.experimental.pallas import tpu as pltpu


def _conv1d_relu_kernel(x_ref, w_ref, b_ref, o_ref):
    # x_ref: (L_pad, C_in)      f32   -- full padded sequence of ONE batch row
    #                                    (resident across the inner L-tile axis)
    # w_ref: (K*C_in, C_out)    bf16  -- im2col-folded Conv1d weight (resident)
    # b_ref: (1, C_out)         f32
    # o_ref: (L_TILE, C_out)          -- one output tile
    l_tile, _ = o_ref.shape
    c_in = x_ref.shape[-1]
    k = w_ref.shape[0] // c_in

    l = pl.program_id(1)
    start = pl.multiple_of(l * l_tile, l_tile)

    # Overlapping halo window for this tile, sliced from the resident slab.
    slab = x_ref[pl.ds(start, l_tile + k - 1), :]            # (L_TILE+K-1, C_in)
    slab = slab.astype(jnp.bfloat16)

    # im2col over the K taps -> single matmul with a K*C_in contraction.
    cols = jnp.concatenate(
        [slab[j:j + l_tile, :] for j in range(k)], axis=-1)  # (L_TILE, K*C_in)

    acc = jnp.dot(cols, w_ref[...],
                  preferred_element_type=jnp.float32)        # (L_TILE, C_out) f32
    acc = acc + b_ref[...]                                   # (1, C_out) broadcast
    # activation_function = F.relu ; Dropout(p=0) is identity.
    o_ref[...] = jnp.maximum(acc, 0.0).astype(o_ref.dtype)


def cnn_forward(x, weight, bias, *, padding=1, l_tile=512):
    """Pallas equivalent of CNN.forward (inference, dropout p=0).

    x      : (B, L, C_in)       float32
    weight : (C_out, C_in, K)   (PyTorch Conv1d layout)
    bias   : (C_out,)
    returns: (B, L_out, C_out) with L_out = L + 2*padding - K + 1
    """
    B, L, C_in = x.shape
    C_out, _, K = weight.shape
    L_out = L + 2 * padding - K + 1

    # Choose the L tile: either the whole output row, or a sublane-aligned tile.
    if l_tile >= L_out:
        L_TILE = L_out
    else:
        L_TILE = max(8, (l_tile // 8) * 8)                   # multiple of 8
    num_l = pl.cdiv(L_out, L_TILE)
    L_out_pad = num_l * L_TILE

    # Zero-pad the sequence axis: conv halo (padding on each side) plus the
    # alignment rows needed so L_out_pad tiles evenly.  One extra HBM pass over
    # the (small, C_in=50) input -- accepted; halo reads happen in-VMEM.
    pad_lo = padding
    pad_hi = (L_out_pad + K - 1) - (L + padding)
    x_pad = jnp.pad(x, ((0, 0), (pad_lo, pad_hi), (0, 0)))
    L_pad = x_pad.shape[1]                                   # = L_out_pad + K - 1

    # im2col-folded weight: (K, C_in, C_out) -> (K*C_in, C_out), bf16 for MXU.
    w2 = jnp.transpose(weight, (2, 1, 0)).reshape(K * C_in, C_out)
    w2 = w2.astype(jnp.bfloat16)
    b2 = bias.reshape(1, C_out).astype(jnp.float32)

    cost = pl.CostEstimate(
        flops=2 * B * L_out * K * C_in * C_out,
        transcendentals=0,
        bytes_accessed=(x.size * x.dtype.itemsize
                        + w2.size * 2
                        + B * L_out * C_out * x.dtype.itemsize),
    )

    out = pl.pallas_call(
        _conv1d_relu_kernel,
        out_shape=jax.ShapeDtypeStruct((B, L_out_pad, C_out), x.dtype),
        grid=(B, num_l),
        in_specs=[
            # Whole padded row of one batch element; block index ignores `l`,
            # so it stays VMEM-resident across the inner L-tile loop.
            pl.BlockSpec((None, L_pad, C_in), lambda b, l: (b, 0, 0)),
            # Weights / bias: constant index map -> resident for the whole grid.
            pl.BlockSpec((K * C_in, C_out), lambda b, l: (0, 0)),
            pl.BlockSpec((1, C_out), lambda b, l: (0, 0)),
        ],
        out_specs=pl.BlockSpec((None, L_TILE, C_out), lambda b, l: (b, l, 0)),
        compiler_params=pltpu.CompilerParams(
            dimension_semantics=("parallel", "arbitrary")),
        cost_estimate=cost,
    )(x_pad, w2, b2)

    if L_out_pad != L_out:
        out = out[:, :L_out, :]
    return out


def cnn_forward_ref(x, weight, bias, *, padding=1):
    """Plain-JAX f32 reference (same math, no Pallas) for verification."""
    C_out, C_in, K = weight.shape
    L = x.shape[1]
    L_out = L + 2 * padding - K + 1
    x_pad = jnp.pad(x, ((0, 0), (padding, padding), (0, 0)))
    w_k = jnp.transpose(weight, (2, 1, 0))                   # (K, C_in, C_out)
    acc = jnp.zeros((x.shape[0], L_out, C_out), jnp.float32)
    for k in range(K):
        acc = acc + jnp.einsum("blc,cd->bld", x_pad[:, k:k + L_out, :], w_k[k])
    acc = acc + bias[None, None, :]
    return jnp.maximum(acc, 0.0)


if __name__ == "__main__":
    # Module defaults: input_size=50, hidden_size=256, kernel_size=3, padding=1,
    # activation=relu, dropout=0.  Small batch/seq; l_tile=8 exercises a real
    # (B, L-tiles) grid with a resident slab + halo reads.
    B, L = 2, 16
    C_in, C_out, K, PAD = 50, 256, 3, 1

    key = jax.random.PRNGKey(0)
    kx, kw, kb = jax.random.split(key, 3)

    x = jax.random.normal(kx, (B, L, C_in), dtype=jnp.float32)
    # Deterministic synthetic parameters (Conv1d-shaped), not a checkpoint load.
    weight = jax.random.normal(kw, (C_out, C_in, K), dtype=jnp.float32) * 0.05
    bias = jax.random.normal(kb, (C_out,), dtype=jnp.float32) * 0.05

    out = cnn_forward(x, weight, bias, padding=PAD, l_tile=8)
    out = jax.block_until_ready(out)

    ref = jax.block_until_ready(cnn_forward_ref(x, weight, bias, padding=PAD))
    assert out.shape == (B, L, C_out), out.shape
    # bf16 matmul inputs with f32 accumulation -> loosened tolerance vs f32 ref.
    assert jnp.allclose(out, ref, atol=2e-2, rtol=2e-2), "mismatch vs reference"

    # TODO(synk): Dropout with p>0 (training mode) would need pltpu.prng_* masking;
    # the module default p=0 makes it the identity, so it is intentionally omitted.
    print("KERNEL_OK")
</pallas_src>

<mosaic_0001>
module attributes {stable_mosaic.version = 11 : i64} {
  func.func @_conv1d_relu_kernel(%arg0: i32, %arg1: i32, %arg2: memref<1x18x50xf32, #tpu.memory_space<vmem>>, %arg3: memref<150x256xbf16, #tpu.memory_space<vmem>>, %arg4: memref<1x256xf32, #tpu.memory_space<vmem>>, %arg5: memref<1x8x256xf32, #tpu.memory_space<vmem>>) attributes {dimension_semantics = [#tpu.dimension_semantics<parallel>, #tpu.dimension_semantics<arbitrary>], iteration_bounds = array<i64: 2, 2>, scalar_prefetch = 0 : i64, scratch_operands = 0 : i64, tpu.core_type = #tpu.core_type<tc>, window_params = [{transform_indices = @transform_0, window_bounds = array<i64: 1, 18, 50>}, {pipeline_mode = #tpu.pipeline_mode<synchronous>, transform_indices = @transform_1, window_bounds = array<i64: 150, 256>}, {pipeline_mode = #tpu.pipeline_mode<synchronous>, transform_indices = @transform_2, window_bounds = array<i64: 1, 256>}, {transform_indices = @transform_3, window_bounds = array<i64: 1, 8, 256>}]} {
    %c8_i32 = arith.constant 8 : i32
    %0 = arith.muli %arg1, %c8_i32 : i32
    %1 = tpu.assume_multiple %0, 8 : i32
    %c0 = arith.constant 0 : index
    %2 = arith.index_cast %1 : i32 to index
    %c0_0 = arith.constant 0 : index
    %3 = vector.load %arg2[%c0, %2, %c0_0] : memref<1x18x50xf32, #tpu.memory_space<vmem>>, vector<1x10x50xf32>
    %4 = vector.shape_cast %3 : vector<1x10x50xf32> to vector<10x50xf32>
    %5 = arith.truncf %4 : vector<10x50xf32> to vector<10x50xbf16>
    %6 = vector.extract_strided_slice %5 {offsets = [0, 0], sizes = [8, 50], strides = [1, 1]} : vector<10x50xbf16> to vector<8x50xbf16>
    %7 = vector.extract_strided_slice %5 {offsets = [1, 0], sizes = [8, 50], strides = [1, 1]} : vector<10x50xbf16> to vector<8x50xbf16>
    %8 = vector.extract_strided_slice %5 {offsets = [2, 0], sizes = [8, 50], strides = [1, 1]} : vector<10x50xbf16> to vector<8x50xbf16>
    %9 = tpu.concatenate %6, %7, %8 in 1 : vector<8x50xbf16>, vector<8x50xbf16>, vector<8x50xbf16> -> vector<8x150xbf16>
    %c0_1 = arith.constant 0 : index
    %c0_2 = arith.constant 0 : index
    %10 = vector.load %arg3[%c0_1, %c0_2] : memref<150x256xbf16, #tpu.memory_space<vmem>>, vector<150x256xbf16>
    %cst = arith.constant dense<0.000000e+00> : vector<8x256xf32>
    %11 = tpu.matmul %9, %10, %cst {dimension_numbers = #tpu.dot_dimension_numbers<[1], [0], [0], [1], [0, 0, 1, 1], [], []>} : vector<8x150xbf16>, vector<150x256xbf16>, vector<8x256xf32> -> vector<8x256xf32>
    %c0_3 = arith.constant 0 : index
    %c0_4 = arith.constant 0 : index
    %12 = vector.load %arg4[%c0_3, %c0_4] : memref<1x256xf32, #tpu.memory_space<vmem>>, vector<1x256xf32>
    %13 = vector.broadcast %12 : vector<1x256xf32> to vector<8x256xf32>
    %14 = arith.addf %11, %13 : vector<8x256xf32>
    %cst_5 = arith.constant 0.000000e+00 : f32
    %15 = vector.broadcast %cst_5 : f32 to vector<8x256xf32>
    %16 = arith.maximumf %14, %15 : vector<8x256xf32>
    %c0_6 = arith.constant 0 : index
    %c0_7 = arith.constant 0 : index
    %c0_8 = arith.constant 0 : index
    %17 = vector.load %arg5[%c0_6, %c0_7, %c0_8] : memref<1x8x256xf32, #tpu.memory_space<vmem>>, vector<1x8x256xf32>
    %18 = vector.shape_cast %17 : vector<1x8x256xf32> to vector<8x256xf32>
    %19 = vector.shape_cast %16 : vector<8x256xf32> to vector<1x8x256xf32>
    tpu.vector_store %arg5[%c0_6, %c0_7, %c0_8], %19 {strides = array<i32>} : memref<1x8x256xf32, #tpu.memory_space<vmem>>, vector<1x8x256xf32>,
    return
  }
  func.func @transform_0(%arg0: i32, %arg1: i32) -> (i32, i32, i32) {
    %c0_i32 = arith.constant 0 : i32
    %c0_i32_0 = arith.constant 0 : i32
    %c0_i32_1 = arith.constant 0 : i32
    return %arg0, %c0_i32, %c0_i32_0 : i32, i32, i32
  }
  func.func @transform_1(%arg0: i32, %arg1: i32) -> (i32, i32) {
    %c0_i32 = arith.constant 0 : i32
    %c0_i32_0 = arith.constant 0 : i32
    %c0_i32_1 = arith.constant 0 : i32
    return %c0_i32, %c0_i32_0 : i32, i32
  }
  func.func @transform_2(%arg0: i32, %arg1: i32) -> (i32, i32) {
    %c0_i32 = arith.constant 0 : i32
    %c0_i32_0 = arith.constant 0 : i32
    %c0_i32_1 = arith.constant 0 : i32
    return %c0_i32, %c0_i32_0 : i32, i32
  }
  func.func @transform_3(%arg0: i32, %arg1: i32) -> (i32, i32, i32) {
    %c0_i32 = arith.constant 0 : i32
    %c0_i32_0 = arith.constant 0 : i32
    return %arg0, %arg1, %c0_i32 : i32, i32, i32
  }
}

</mosaic_0001>

<bundles_post_ra>
// kernel: tpu_custom_call.1
= control target key start
LH: loop header
LB: loop body
LE: loop exit
PB: predicated region body
PF: predicated region fallthrough
CT: control target
= control target key end

     0   :  { %8 = vsyncpa [#allocation3], 0  ;;  %s994_s0 = inlined_call_operand.vmem [shape: f32[2,18,50], index: 0, kind: input, shape index: {}]   ;;  %s995_s1 = inlined_call_operand.hbm [shape: bf16[150,256], index: 1, kind: input, shape index: {}]   ;;  %s996_s2 = inlined_call_operand.vmem [shape: f32[1,256], index: 2, kind: input, shape index: {}]   ;;  %s997_s3 = inlined_call_operand.hbm [shape: f32[2,16,256], index: 3, kind: output, shape index: {}]  }
   0x1   :  { %9 = vsyncpa [#allocation4], 0 }
   0x2   :  { %11 = vsyncpa [#allocation4 + $0x1], 0  ;;  %s817_s12 = smov 0   ;;  %s819_s13 = smov 0  }
   0x3   :  { %s821_s14 = smov 0   ;;  %s823_s15 = smov 0  }
   0x4   :  { %s825_s16 = smov 0   ;;  %s827_s17 = smov 0  }
   0x5   :  { %s829_s18 = smov 0   ;;  %s831_s19 = smov 0  }
   0x6 LB: > { %s509_s20 = sadd.s32 4294967295, %s789_s19   ;;  %s510_s21 = sadd.s32 4294967294, %s789_s19   ;;  %s789_s19 = sphi %s831_s19, %s17_s19   ;;  %s785_s18 = sphi %s829_s18, %s1017_s18   ;;  %s781_s17 = sphi %s827_s17, %s1016_s17   ;;  %s777_s16 = sphi %s825_s16, %s1015_s16   ;;  %s773_s15 = sphi %s823_s15, %s1014_s15   ;;  %s769_s14 = sphi %s821_s14, %s1013_s14   ;;  %s765_s13 = sphi %s819_s13, %s1012_s13   ;;  %s761_s12 = sphi %s817_s12, %s1011_s12  }
   0x7   : > { %s26_s22 = sadd.s32 1, %s781_s17  ;;  %s29_s23 = sadd.s32 1, %s785_s18 }
   0x8   : > { %p27_p0 = scmp.ge.s32.totalorder %s26_s22, 2  ;;  %s106_s24 = sadd.s32 1, %s769_s14 }
   0x9   : > { %p116_p1 = scmp.ne.s32.totalorder %s769_s14, %s765_s13  ;;  %p117_p2 = scmp.eq.s32.totalorder %s509_s20, 3 }
   0xa   : > { %s1019_s22 = smov (%p27_p0, %s26_s22), 0  ;;  %s1021_s23 = smov (!%p27_p0, %s29_s23), %s785_s18 }
   0xb   : > { %s102_s25 = ssub.s32 %s781_s17, %s1019_s22  ;;  %p869_p3 = por %p117_p2, %p116_p1 }
   0xc   : > { %p31_p4 = scmp.ge.s32.totalorder %s1021_s23, 2  ;;  %p122_p5 = scmp.ne.s32.totalorder %s765_s13, %s761_s12 }
   0xd   : > { %s1002_s26 = scalar_select %p869_p3, 1, 0 }
   0xe   : > { %p123_p6 = scmp.eq.s32.totalorder %s510_s21, 3  ;;  %p511_p7 = scmp.ge.s32.totalorder %s789_s19, 1 }
   0xf   : > { %s1023_s23 = smov (%p31_p4, %s1021_s23), 0  ;;  %p130_p9 = scmp.lt.s32.totalorder %s789_s19, 5 }
  0x10   : > { %p878_p8 = por %p123_p6, %p122_p5  ;;  %s101_s28 = ssub.s32 %s785_s18, %s1023_s23 }
  0x11   : > { %s103_s29 = sor.u32 %s102_s25, %s101_s28  ;;  %p885_p10 = pnand %p511_p7, %p130_p9 }
  0x12   : > { %s1003_s27 = scalar_select %p878_p8, 1, 0 }
  0x13   : > { %s1004_s30 = scalar_select %p885_p10, 1, 0 }
  0x14   : > { %p104_p11 = scmp.eq.s32.totalorder %s103_s29, 0  ;;  %p889_p12 = scmp.eq.s32.totalorder %s509_s20, 0 }
  0x15   : > { %p554_p13 = pneg %p885_p10  ;;  %s791_s6 = smov [#allocation2]  }
  0x16   : > { %s1005_s4 = scalar_select %p889_p12, 1, 0 }
  0x17   : > { %s896_s5 = scalar_select %p104_p11, %s769_s14, %s106_s24  }
  0x18   : > { %s142_s7 = sshll.u32 %s791_s6, 4  ;;  %p900_p0 = pnand %p889_p12, %p554_p13  ;;  %s143_s7 = int_to_ptr.vmem [resolvable:$true] %s142_s7 }
  0x19   : > { %s663_s11 = scalar_lea.hbm %s995_s1, 2432 }
  0x1a   : > { %p664_p1 = scmp.ne.s32.totalorder %s995_s1, %s663_s11  ;;  %p665_p2 = pneg %p900_p0 }
  0x1b   : > { %p670_p6 = scmp.lt.u32.totalorder %s663_s11, %s995_s1 }
  0x1c   : > { %p666_p4 = pnand %p665_p2, %p664_p1 }
  0x1e   : > { %p667_p5 = pneg %p666_p4 }
  0x20   : > { %p672_p7 = pnand %p670_p6, %p667_p5 }
  0x22   : > { %675 = shalt.err (!%p672_p7)
}
  0x23   : > { %s676_s28 = scalar_lea.vmem %s143_s7, 2432  ;;  %p684_p8 = scmp.lt.s32.totalorder %s143_s7, %s143_s7 }
  0x24   : > { %p677_p9 = scmp.ne.s32.totalorder %s143_s7, %s676_s28  ;;  %p685_p3 = scmp.lt.s32.totalorder %s676_s28, %s676_s28 }
  0x26   : > { %p679_p11 = pnand %p677_p9, %p665_p2  ;;  %p686_p12 = por %p685_p3, %p684_p8 }
  0x28   : > { %p680_p13 = pneg %p679_p11 }
  0x2a   : > { %p687_p10 = pnand %p686_p12, %p680_p13 }
  0x2c   : > { %690 = shalt.err (!%p687_p10)
}
  0x2d   : > { %s792_s29 = smov 128   ;;  %s793_s6 = smov 8  }
  0x2e   : > { %557 = dma.hbm_to_vmem [thread:$0]  (!%p900_p0), %s995_s1, 2432, %s143_s7, [#allocation3], %s792_s29, %s792_s29, %s793_s6  }
  0x2f   : > { %p1007_p1 = scmp.ne.s32.totalorder %s1004_s30, 0 }
  0x30   : > { %p1008_p4 = scmp.ne.s32.totalorder (!%p1007_p1), %s1005_s4, 0 }
  0x31   : > { %169 = sbr.rel (%p1007_p1) target bundleno = 425 (0x1a9), region = 32 }
  0x38   : > { %752 = dma.done.wait (%p1008_p4), [#allocation3], 2432  }
  0x39   : > { %754 = vsyncadd (%p1008_p4), [#allocation3], 4294964864  ;;  %p193_p3 = scmp.lt.s32.totalorder %s777_s16, 1  ;;  %s518_s8 = sshll.u32 %s773_s15, 3  ;;  %v634_v0 = vld [vmem:[#allocation2 + $0x4] ss:$8 sps:$4 sm:$0xff]   ;;  %v245_v34 = vlaneseq }
  0x3a   : > { %v636_v3 = vld [vmem:[#allocation2] ss:$8 sps:$4 sm:$0xff]   ;;  %360 = vmatprep.subr.bf16.mxu0 %v634_v0  ;;  %v637_v5 = vld [vmem:[#allocation2 + $0x14] ss:$8 sps:$4 sm:$0xff]   ;;  %v639_v6 = vld [vmem:[#allocation2 + $0x10] ss:$8 sps:$4 sm:$0xff]  }
  0x3b   : > { %s194_s11 = scalar_select %p193_p3, %s777_s16, 1  ;;  %361 = vmatpush1.bf16.msra.mxu0 %v636_v3  ;;  %v640_v9 = vld [vmem:[#allocation2 + $0x24] ss:$8 sps:$4 sm:$0xff]   ;;  %v642_v11 = vld [vmem:[#allocation2 + $0x20] ss:$8 sps:$4 sm:$0xff]   ;;  %vm353_vm0 = vcmask 1042432  }
  0x3c   : > { %362 = vmatprep.subr.bf16.mxu0 %v637_v5  ;;  %v643_v13 = vld [vmem:[#allocation2 + $0x34] ss:$8 sps:$4 sm:$0xff]   ;;  %s794_s30 = smov 50   ;;  %v645_v15 = vld [vmem:[#allocation2 + $0x30] ss:$8 sps:$4 sm:$0xff]   ;;  %s795_s4 = smov 100  }
  0x3d   : > { %s547_s20 = smul.u32 24, %s194_s11  ;;  %v646_v16 = vld [vmem:[#allocation2 + $0x44] ss:$8 sps:$4 sm:$0xff]   ;;  %v648_v17 = vld [vmem:[#allocation2 + $0x40] ss:$8 sps:$4 sm:$0xff]   ;;  %vm217_vm1 = vcmask 408576  }
  0x3e   : > { %v649_v18 = vld [vmem:[#allocation2 + $0x54] ss:$8 sps:$4 sm:$0xff]   ;;  %v651_v19 = vld [vmem:[#allocation2 + $0x50] ss:$8 sps:$4 sm:$0xff]   ;;  %v652_v20 = vld [vmem:[#allocation2 + $0x64] ss:$8 sps:$4 sm:$0xff]  }
  0x3f   : > { %s197_s7 = scalar_lea.vmem %s994_s0, %s547_s20  ;;  %363 = vmatpush1.bf16.msra.mxu0 %v639_v6  ;;  %v654_v21 = vld [vmem:[#allocation2 + $0x60] ss:$8 sps:$4 sm:$0xff]   ;;  %v655_v22 = vld [vmem:[#allocation2 + $0x74] ss:$8 sps:$4 sm:$0xff]   ;;  %v657_v23 = vld [vmem:[#allocation2 + $0x70] ss:$8 sps:$4 sm:$0xff]  }
  0x40   : > { %s200_s25 = scalar_lea.vmem %s197_s7, %s518_s8  ;;  %364 = vmatprep.subr.bf16.mxu0 %v640_v9  ;;  %v658_v24 = vld [vmem:[#allocation2 + $0x84] ss:$8 sps:$4 sm:$0xff]   ;;  %v242_v25 = vld [vmem:[#allocation2 + $0x90] sm:$0x77]  ;;  %v660_v26 = vld [vmem:[#allocation2 + $0x80] ss:$8 sps:$4 sm:$0xff]  }
  0x41   : > { %v201_v1 = vld [vmem:[%s200_s25] sm:$0xff]  ;;  %v202_v2 = vld [vmem:[%s200_s25 + $0x8] sm:$0x3]  ;;  %v538_v27 = vcombine.high %v242_v25, %v242_v25  ;;  %v537_v28 = vcombine.low %v242_v25, %v242_v25  ;;  %vm350_vm2 = vcmask 179200   ;;  %vm220_vm3 = vcmask 818176   ;;  %s190_s28 = sand.u32 1, %s765_s13  }
  0x42   : > { %v203_v4 = vpack.c.bf16 %v202_v2, %v201_v1  ;;  %v246_v35 = vshrl.u32 %v245_v34, 7  ;;  %s516_s29 = sshll.u32 %s190_s28, 4  ;;  %v243_v37 = vld [vmem:[%s996_s2] sm:$0x3]  ;;  %s542_s10 = sshll.u32 %s773_s15, 1 }
  0x43   : > { %365 = vmatpush1.bf16.msra.mxu0 %v642_v11  ;;  %v355_v29 = vsel %vm353_vm0, %v537_v28, 0  ;;  %s543_s11 = sshll.u32 %s777_s16, 2  ;;  %s192_s21 = scalar_lea.vmem [#allocation5], %s516_s29 }
  0x44   : > { %v205_v7 = vshrl.u32 %v203_v4, 16  ;;  %v207_v8 = vshll.u32 %v203_v4, 16  ;;  %v214_v14 = vrot.slane %v203_v4, 1  ;;  %366 = vmatprep.subr.bf16.mxu0 %v643_v13  ;;  %v247_v36 = vsub.s32 0, %v246_v35  ;;  %s418_s20 = sadd.s32 %s543_s11, %s542_s10  ;;  %s422_s24 = sshll.u32 %s192_s21, 4  ;;  %s943_s24 = int_to_ptr.vmem [resolvable:$true] %s422_s24 }
  0x45   : > { %v251_v38 = vsub.s32 1, %v246_v35  ;;  %s544_s8 = sshll.u32 %s418_s20, 7  ;;  %s406_s16 = scalar_lea.sflag [#allocation4], %s190_s28 }
  0x46   : > { %v209_v10 = vrot.slane %v207_v8, 1  ;;  %v248_v39 = vrot.slane %v243_v37, %v247_v36  ;;  %s941_s15 = scalar_lea.hbm %s997_s3, %s544_s8  ;;  %p1009_p10 = scmp.ne.s32.totalorder %s1002_s26, 0 }
  0x47   : > { %367 = vmatpush1.bf16.msra.mxu0 %v645_v15  ;;  %v252_v40 = vrot.slane %v243_v37, %v251_v38 }
  0x48   : > { %v210_v12 = vor.u32 %v209_v10, %v205_v7  ;;  %368 = vmatprep.subr.bf16.mxu0 %v646_v16 }
  0x4a   : > { %211 = vrot.lane.b32.xlu0 %v210_v12, %s794_s30  ;;  %s691_s30 = scalar_lea.vmem %s943_s24, 256 }
  0x4b   : > { %369 = vmatpush1.bf16.msra.mxu0 %v648_v17  ;;  %p692_p8 = scmp.ne.s32.totalorder %s943_s24, %s691_s30 }
  0x4c   : > { %370 = vmatprep.subr.bf16.mxu0 %v649_v18 }
  0x4d   : > { %p693_p12 = pnand %p692_p8, %p1009_p10 }
  0x4e   : > { %215 = vrot.lane.b32.xlu0 %v214_v14, %s795_s4  ;;  %s796_s4 = smov [#allocation5]  }
  0x4f   : > { %371 = vmatpush1.bf16.msra.mxu0 %v651_v19  ;;  %p694_p0 = pneg %p693_p12  ;;  %s695_s29 = sshll.u32 %s796_s4, 4  ;;  %s696_s29 = int_to_ptr.vmem [resolvable:$false] %s695_s29 }
  0x50   : > { %372 = vmatprep.subr.bf16.mxu0 %v652_v20  ;;  %s697_s6 = scalar_lea.vmem %s696_s29, 512  ;;  %p698_p2 = scmp.lt.s32.totalorder %s943_s24, %s696_s29 }
  0x51   : > { %p699_p5 = scmp.lt.s32.totalorder %s697_s6, %s691_s30 }
  0x53   : > { %373 = vmatpush1.bf16.msra.mxu0 %v654_v21  ;;  %p700_p6 = por %p699_p5, %p698_p2 }
  0x54   : > { %374 = vmatprep.subr.bf16.mxu0 %v655_v22 }
  0x55   : > { %p701_p7 = pnand %p700_p6, %p694_p0 }
  0x57   : > { %375 = vmatpush1.bf16.msra.mxu0 %v657_v23 }
  0x58   : > { %376 = vmatprep.subr.bf16.mxu0 %v658_v24 }
  0x5b   : > { %377 = vmatpush1.bf16.msra.mxu0 %v660_v26 }
  0x5c   : > { %539 = vmatprep.subr.msk.bf16.mxu0 %vm353_vm0, %v538_v27 }
  0x5f   : > { %379 = vmatpush1.bf16.msra.mxu0 %v355_v29 }
  0xbc   : > { %v212_v30 = vpop.permute.xlu0 %211 }
  0xbd   : > { %v219_v31 = vsel %vm217_vm1, %v203_v4, %v212_v30 }
  0xc0   : > { %v216_v32 = vpop.permute.xlu0 %215 }
  0xc1   : > { %540 = vmatprep.mubr.msk.bf16.mxu0 %vm350_vm2, %v216_v32  ;;  %v222_v33 = vsel %vm220_vm3, %v219_v31, %v216_v32 }
  0xc2   : > { %393 = vmatmul.mubr.bf16.vlgmr.msra.gmra.mrb[0].mxu0 %v222_v33 }
 0x195   : > { %v394_v41 = vpop.f32.mrb[0].mxu0 }
 0x196   : > { %v395_v42 = vadd.f32 %v394_v41, %v248_v39  ;;  %v396_v43 = vpop.f32.mrb[1].mxu0 }
 0x197   : > { %v397_v44 = vadd.f32 %v396_v43, %v252_v40  ;;  %v398_v45 = vpop.f32.mrb[2].mxu0 }
 0x198   : > { %v401_v46 = vmax.f32 %v395_v42, 0.0  ;;  %v399_v47 = vpop.f32.mrb[3].mxu0 }
 0x199   : > { %v402_v48 = vmax.f32 %v397_v44, 0.0 }
 0x19a   : > { %403 = vst [vmem:[%s192_s21] sm:$0xff] %v401_v46 }
 0x19b   : > { %404 = vst [vmem:[%s192_s21 + $0x8] sm:$0xff] %v402_v48 }
 0x19c   : > { %704 = shalt.err (!%p701_p7)
}
 0x19d   : > { %s705_s28 = scalar_lea.hbm %s941_s15, 256  ;;  %s709_s11 = scalar_lea.hbm %s997_s3, 1024 }
 0x19e   : > { %p706_p9 = scmp.ne.s32.totalorder %s941_s15, %s705_s28  ;;  %p710_p1 = scmp.lt.u32.totalorder %s941_s15, %s997_s3 }
 0x19f   : > { %p711_p4 = scmp.lt.u32.totalorder %s709_s11, %s705_s28  ;;  %p713_p8 = scmp.lt.u32.totalorder %s705_s28, %s941_s15 }
 0x1a0   : > { %p707_p11 = pnand %p706_p9, %p1009_p10 }
 0x1a1   : > { %p712_p3 = por %p711_p4, %p710_p1 }
 0x1a2   : > { %p708_p13 = pneg %p707_p11 }
 0x1a3   : > { %p714_p12 = por %p713_p8, %p712_p3 }
 0x1a5   : > { %p715_p0 = pnand %p714_p12, %p708_p13 }
 0x1a7   : > { %718 = shalt.err (!%p715_p0)
}
 0x1a8   : > { %552 = dma.vmem_to_hbm [thread:$0]  (%p1009_p10), %s943_s24, 256, %s941_s15, %s406_s16  }
 0x1a9 PF: > { %p564_p2 = scmp.ge.s32.totalorder %s789_s19, 2  ;;  %s434_s21 = sand.u32 1, %s761_s12  }
 0x1aa   : > { %p1010_p5 = scmp.ne.s32.totalorder %s1003_s27, 0  ;;  %s435_s7 = scalar_lea.sflag [#allocation4], %s434_s21 }
 0x1ac   : > { %p559_p6 = pnand %p564_p2, %p1010_p5 }
 0x1ae   : > { %756 = dma.done.wait (!%p559_p6), %s435_s7, 256  }
 0x1af   : > { %758 = vsyncadd (!%p559_p6), %s435_s7, 4294967040  ;;  %s17_s19 = sadd.s32 1, %s789_s19   ;;  %s1011_s12 = smov %s765_s13 }
 0x1b0   : > { %p14_p7 = scmp.ge.s32.totalorder %s17_s19, 6   ;;  %s1012_s13 = smov %s769_s14 }
 0x1b1   : > { %s1013_s14 = smov %s896_s5  ;;  %s1014_s15 = smov %s781_s17 }
 0x1b2   : > { %s1015_s16 = smov %s785_s18  ;;  %s1016_s17 = smov %s1019_s22 }
 0x1b3   : > { %s1017_s18 = smov %s1023_s23  ;;  %16 = sbr.rel (!%p14_p7) target bundleno = 6 (0x6), region = 73 }
 0x1ba   :  { %440 = vsyncpa [#allocation3], 1 }
 0x1bb   :  { %442 = vsyncpa [#allocation3 + $0x1], 1 }
 0x1bc   :  { %443 = vsyncpa [#allocation4], 1 }
 0x1bd   :  { %445 = vsyncpa [#allocation4 + $0x1], 1 }

</bundles_post_ra>
